<compile_context>
chip_gen: v7x
topology: tpu7x:2x2x1
jax: 0.10.0
libtpu: 0.0.40
codegen_flags: <defaults>
</compile_context>

<pallas_src>
import math
from types import SimpleNamespace

import jax
import jax.numpy as jnp
from jax.experimental import pallas as pl
from jax.experimental.pallas import tpu as pltpu


LANE = 128      # TPU lane width; all channel dims padded to this.
S_CHUNK = 8     # neighbour-axis chunk processed per grid step.


def _round_up(x, m):
    return ((x + m - 1) // m) * m


# ---------------------------------------------------------------------------
# Pallas kernel: shared MLP (3 x [matmul(+folded BN) -> ReLU]) + running max
# over neighbour chunks.  Grid = (row_tiles, s_chunks); the output block is
# resident across the innermost s axis and acts as the max accumulator.
# ---------------------------------------------------------------------------
def _mlp_maxpool_kernel(x_ref, w1_ref, w2_ref, w3_ref, o_ref):
    # x_ref : (s_chunk, tile_m, 128) bf16   (s-major; rows within a slice are b*P+p)
    # wN_ref: (128, 128)             bf16   (eval-BN scale pre-folded; bias == 0)
    # o_ref : (tile_m, 128)          f32    (same block for every s step)
    s = pl.program_id(1)
    sc, tm, cp = x_ref.shape

    # Leading-dim collapse is a layout relabel (tm % 16 == 0, lane dim == 128).
    x = x_ref[...].reshape(sc * tm, cp)

    h = jnp.dot(x, w1_ref[...], preferred_element_type=jnp.float32)
    h = jnp.maximum(h, 0.0).astype(jnp.bfloat16)
    h = jnp.dot(h, w2_ref[...], preferred_element_type=jnp.float32)
    h = jnp.maximum(h, 0.0).astype(jnp.bfloat16)
    h = jnp.dot(h, w3_ref[...], preferred_element_type=jnp.float32)
    h = jnp.maximum(h, 0.0)                              # (sc*tm, 128) f32, >= 0

    # Max over this chunk's s slices: pairwise VPU max over contiguous
    # (tm, 128) row slabs (no reshape / cross-sublane reduction).
    acc = h[0:tm, :]
    for k in range(1, sc):
        acc = jnp.maximum(acc, h[k * tm:(k + 1) * tm, :])

    # Output block is resident across the s axis -> running-max accumulator.
    # (Init from the first chunk is safe: post-ReLU values and zero-padded
    #  rows/lanes/slices are all >= 0.)
    @pl.when(s == 0)
    def _():
        o_ref[...] = acc

    @pl.when(s != 0)
    def _():
        o_ref[...] = jnp.maximum(o_ref[...], acc)


def mlp_maxpool(grouped_s, params, c_out):
    """grouped_s: (S, B, P, Cin) f32 (s-major) -> (B, P, c_out) f32."""
    S, B, P, Cin = grouped_s.shape
    assert Cin <= LANE, "channel dim exceeds single lane tile"
    M = B * P

    x = grouped_s.reshape(S, M, Cin)
    # Lane-pad channels to 128 (zero rows of W make padding inert).
    x = jnp.pad(x, ((0, 0), (0, 0), (0, LANE - Cin)))

    # Row dim: multiple of 16 (bf16 sublane tile) and >=2 row tiles when
    # possible so dimension_semantics=("parallel",...) can shard across
    # v7x's two TensorCores; tile capped at 256 rows to bound VMEM.
    m_pad = _round_up(M, 16)
    if m_pad > 256:
        tile_m = 256
        m_pad = _round_up(m_pad, tile_m)
    elif m_pad >= 32:
        m_pad = _round_up(m_pad, 32)
        tile_m = m_pad // 2
    else:
        tile_m = m_pad

    # Neighbour dim: chunked so the per-step intermediate stays small; padded
    # s-slices are all-zero and cannot affect the post-ReLU max.
    s_chunk = S if S <= S_CHUNK else S_CHUNK
    s_pad = _round_up(S, s_chunk)

    if (m_pad - M) or (s_pad - S):
        x = jnp.pad(x, ((0, s_pad - S), (0, m_pad - M), (0, 0)))
    x = x.astype(jnp.bfloat16)

    w1, w2, w3 = params
    grid = (m_pad // tile_m, s_pad // s_chunk)

    # Cost estimate (helps XLA overlap surrounding gather/FPS/ball-query ops).
    flops = 3 * 2 * s_pad * m_pad * LANE * LANE
    bytes_accessed = (s_pad * m_pad * LANE * 2      # x slab (bf16)
                      + 3 * LANE * LANE * 2         # weights (bf16)
                      + m_pad * LANE * 4)           # output (f32)

    # VMEM budget: double-buffered x / out / weights + f32 intermediates.
    x_block = s_chunk * tile_m * LANE * 2
    out_block = tile_m * LANE * 4
    w_block = 3 * LANE * LANE * 2
    inter = s_chunk * tile_m * LANE * 4
    vmem_need = 2 * x_block + 2 * out_block + 2 * w_block + 4 * inter
    vmem_limit = int(min(max(vmem_need + (2 << 20), 16 << 20), 64 << 20))

    w_spec = pl.BlockSpec((LANE, LANE), lambda i, s: (0, 0))

    out = pl.pallas_call(
        _mlp_maxpool_kernel,
        out_shape=jax.ShapeDtypeStruct((m_pad, LANE), jnp.float32),
        grid=grid,
        in_specs=[pl.BlockSpec((s_chunk, tile_m, LANE), lambda i, s: (s, i, 0)),
                  w_spec, w_spec, w_spec],
        out_specs=pl.BlockSpec((tile_m, LANE), lambda i, s: (i, 0)),
        compiler_params=pltpu.CompilerParams(
            dimension_semantics=("parallel", "arbitrary"),
            vmem_limit_bytes=vmem_limit),
        cost_estimate=pl.CostEstimate(flops=flops, transcendentals=0,
                                      bytes_accessed=bytes_accessed),
    )(x, w1, w2, w3)

    return out[:M, :c_out].reshape(B, P, c_out)


# ---------------------------------------------------------------------------
# Plain-JAX glue: FPS, ball query, grouping (data-dependent gathers)
# ---------------------------------------------------------------------------
def gather_points(points, idx):
    """points (B, N, C), idx int32 (B, ...) -> (B, ..., C)."""
    return jax.vmap(lambda p, i: p[i])(points, idx)


def gather_points_smajor(points, idx_sbp):
    """points (B, N, C), idx (S, B, P) -> (S, B, P, C) -- kernel's s-major layout."""
    return jax.vmap(lambda i_bp: gather_points(points, i_bp))(idx_sbp)


def farthest_point_sample(xyz, npoint):
    """xyz (B, N, 3) -> (B, npoint) int32. Matches CUDA FPS (first index = 0)."""
    B, N, _ = xyz.shape
    inds = jnp.zeros((B, npoint), dtype=jnp.int32)
    distance = jnp.full((B, N), 1e10, dtype=jnp.float32)
    farthest = jnp.zeros((B,), dtype=jnp.int32)

    def body(i, carry):
        inds, distance, farthest = carry
        inds = inds.at[:, i].set(farthest)
        centroid = gather_points(xyz, farthest[:, None])          # (B, 1, 3)
        dist = jnp.sum((xyz - centroid) ** 2, axis=-1)            # (B, N)
        distance = jnp.minimum(distance, dist)
        farthest = jnp.argmax(distance, axis=-1).astype(jnp.int32)
        return inds, distance, farthest

    inds, _, _ = jax.lax.fori_loop(0, npoint, body, (inds, distance, farthest))
    return inds


def ball_query(radius, nsample, xyz, new_xyz):
    """xyz (B, N, 3), new_xyz (B, P, 3) -> idx (B, P, nsample) int32."""
    N = xyz.shape[1]
    sqrdists = jnp.sum((new_xyz[:, :, None, :] - xyz[:, None, :, :]) ** 2, -1)
    inside = sqrdists < radius * radius
    idx = jnp.where(inside, jnp.arange(N, dtype=jnp.int32)[None, None, :], N)
    idx = jnp.sort(idx, axis=-1)[:, :, :nsample]
    first = idx[:, :, 0:1]
    idx = jnp.where(idx == N, first, idx)
    idx = jnp.where(idx == N, 0, idx)        # degenerate: no point in radius
    return idx.astype(jnp.int32)


def sa_module(xyz, features, params, npoint, radius, nsample, c_out,
              use_xyz=True, normalize_xyz=True):
    """PointnetSAModuleVotes forward (single-scale grouping, max pooling)."""
    fps_inds = farthest_point_sample(xyz, npoint)                 # (B, P)
    new_xyz = gather_points(xyz, fps_inds)                        # (B, P, 3)

    idx = ball_query(radius, nsample, xyz, new_xyz)               # (B, P, S)
    idx_s = jnp.transpose(idx, (2, 0, 1))                         # (S, B, P) int32

    # Gather directly in s-major order so the kernel's (S, B*P, C) slab needs
    # no large f32 transpose.
    grouped_xyz = gather_points_smajor(xyz, idx_s) - new_xyz[None]  # (S,B,P,3)
    if normalize_xyz:
        grouped_xyz = grouped_xyz / radius

    if features is not None:
        grouped_feat = gather_points_smajor(features, idx_s)        # (S,B,P,C)
        grouped = (jnp.concatenate([grouped_xyz, grouped_feat], axis=-1)
                   if use_xyz else grouped_feat)
    else:
        grouped = grouped_xyz

    new_features = mlp_maxpool(grouped, params, c_out)            # (B, P, Cout)
    return new_xyz, new_features, fps_inds


# ---------------------------------------------------------------------------
# Parameter construction (BN folded into weights, lane-padded, bf16)
# ---------------------------------------------------------------------------
def init_mlp_params(key, dims, eps=1e-5):
    """dims e.g. [6, 16, 16, 32] -> 3 lane-padded (128,128) bf16 weights.

    Conv(1x1, bias=False) + eval-mode BN with identity running stats folds to
    W' = W / sqrt(1+eps) and a zero bias, so no bias arrays are produced.
    """
    params = []
    for i in range(len(dims) - 1):
        key, k = jax.random.split(key)
        cin, cout = dims[i], dims[i + 1]
        assert cin <= LANE and cout <= LANE
        w = jax.random.normal(k, (cin, cout), jnp.float32) * 0.1
        w_folded = w / math.sqrt(1.0 + eps)                       # fold BN scale
        w_pad = jnp.zeros((LANE, LANE), jnp.float32).at[:cin, :cout].set(w_folded)
        params.append(w_pad.astype(jnp.bfloat16))
    return params, key


def make_cfg():
    return SimpleNamespace(
        use_xyz=True,
        normalize_xyz=True,
        layer1=SimpleNamespace(npoint=32, radius_list=[0.4],
                               nsample_list=[16], mlp_list=[3, 16, 16, 32]),
        layer2=SimpleNamespace(npoint=16, radius_list=[0.8],
                               nsample_list=[16], mlp_list=[32, 32, 32, 64]),
        layer3=SimpleNamespace(npoint=8, radius_list=[1.2],
                               nsample_list=[8], mlp_list=[64, 64, 64, 128]),
    )


def init_backbone_params(key, cfg):
    all_params = []
    for layer in (cfg.layer1, cfg.layer2, cfg.layer3):
        dims = list(layer.mlp_list)
        if cfg.use_xyz:
            dims[0] += 3
        p, key = init_mlp_params(key, dims)
        all_params.append(p)
    return all_params


# ---------------------------------------------------------------------------
# Backbone
# ---------------------------------------------------------------------------
def pointnet2_backbone(pointcloud, params, cfg):
    """pointcloud (B, N, 3 + C_feat) -> (xyz (B,K,3), features (B,D,K))."""
    xyz = pointcloud[..., 0:3]
    features = pointcloud[..., 3:] if pointcloud.shape[-1] > 3 else None

    for layer, layer_params in zip((cfg.layer1, cfg.layer2, cfg.layer3), params):
        xyz, features, _ = sa_module(
            xyz, features, layer_params,
            npoint=layer.npoint,
            radius=layer.radius_list[0],
            nsample=layer.nsample_list[0],
            c_out=layer.mlp_list[-1],
            use_xyz=cfg.use_xyz,
            normalize_xyz=cfg.normalize_xyz)

    return xyz, jnp.transpose(features, (0, 2, 1))                # (B,K,3),(B,D,K)


if __name__ == "__main__":
    cfg = make_cfg()
    B, N, C_feat = 2, 64, 3

    key = jax.random.PRNGKey(0)
    key, k_pc = jax.random.split(key)
    pointcloud = jax.random.uniform(k_pc, (B, N, 3 + C_feat), jnp.float32)

    params = init_backbone_params(jax.random.PRNGKey(1), cfg)

    xyz_out, feat_out = pointnet2_backbone(pointcloud, params, cfg)
    xyz_out = jax.block_until_ready(xyz_out)
    feat_out = jax.block_until_ready(feat_out)

    assert xyz_out.shape == (B, cfg.layer3.npoint, 3)
    assert feat_out.shape == (B, cfg.layer3.mlp_list[-1], cfg.layer3.npoint)
    assert xyz_out.dtype == jnp.float32 and feat_out.dtype == jnp.float32
    assert bool(jnp.all(jnp.isfinite(feat_out)))

    print("KERNEL_OK")
</pallas_src>

<mosaic_0001>
module attributes {stable_mosaic.version = 11 : i64} {
  func.func @_mlp_maxpool_kernel(%arg0: i32, %arg1: i32, %arg2: memref<8x32x128xbf16, #tpu.memory_space<vmem>>, %arg3: memref<128x128xbf16, #tpu.memory_space<vmem>>, %arg4: memref<128x128xbf16, #tpu.memory_space<vmem>>, %arg5: memref<128x128xbf16, #tpu.memory_space<vmem>>, %arg6: memref<32x128xf32, #tpu.memory_space<vmem>>) attributes {dimension_semantics = [#tpu.dimension_semantics<parallel>, #tpu.dimension_semantics<arbitrary>], iteration_bounds = array<i64: 2, 2>, scalar_prefetch = 0 : i64, scratch_operands = 0 : i64, tpu.core_type = #tpu.core_type<tc>, window_params = [{transform_indices = @transform_0, window_bounds = array<i64: 8, 32, 128>}, {pipeline_mode = #tpu.pipeline_mode<synchronous>, transform_indices = @transform_1, window_bounds = array<i64: 128, 128>}, {pipeline_mode = #tpu.pipeline_mode<synchronous>, transform_indices = @transform_2, window_bounds = array<i64: 128, 128>}, {pipeline_mode = #tpu.pipeline_mode<synchronous>, transform_indices = @transform_3, window_bounds = array<i64: 128, 128>}, {transform_indices = @transform_4, window_bounds = array<i64: 32, 128>}]} {
    %c0 = arith.constant 0 : index
    %c0_0 = arith.constant 0 : index
    %c0_1 = arith.constant 0 : index
    %0 = vector.load %arg2[%c0, %c0_0, %c0_1] : memref<8x32x128xbf16, #tpu.memory_space<vmem>>, vector<8x32x128xbf16>
    %1 = vector.shape_cast %0 : vector<8x32x128xbf16> to vector<256x128xbf16>
    %c0_2 = arith.constant 0 : index
    %c0_3 = arith.constant 0 : index
    %2 = vector.load %arg3[%c0_2, %c0_3] : memref<128x128xbf16, #tpu.memory_space<vmem>>, vector<128x128xbf16>
    %cst = arith.constant dense<0.000000e+00> : vector<256x128xf32>
    %3 = tpu.matmul %1, %2, %cst {dimension_numbers = #tpu.dot_dimension_numbers<[1], [0], [0], [1], [0, 0, 1, 1], [], []>} : vector<256x128xbf16>, vector<128x128xbf16>, vector<256x128xf32> -> vector<256x128xf32>
    %cst_4 = arith.constant 0.000000e+00 : f32
    %4 = vector.broadcast %cst_4 : f32 to vector<256x128xf32>
    %5 = arith.maximumf %3, %4 : vector<256x128xf32>
    %6 = arith.truncf %5 : vector<256x128xf32> to vector<256x128xbf16>
    %c0_5 = arith.constant 0 : index
    %c0_6 = arith.constant 0 : index
    %7 = vector.load %arg4[%c0_5, %c0_6] : memref<128x128xbf16, #tpu.memory_space<vmem>>, vector<128x128xbf16>
    %cst_7 = arith.constant dense<0.000000e+00> : vector<256x128xf32>
    %8 = tpu.matmul %6, %7, %cst_7 {dimension_numbers = #tpu.dot_dimension_numbers<[1], [0], [0], [1], [0, 0, 1, 1], [], []>} : vector<256x128xbf16>, vector<128x128xbf16>, vector<256x128xf32> -> vector<256x128xf32>
    %cst_8 = arith.constant 0.000000e+00 : f32
    %9 = vector.broadcast %cst_8 : f32 to vector<256x128xf32>
    %10 = arith.maximumf %8, %9 : vector<256x128xf32>
    %11 = arith.truncf %10 : vector<256x128xf32> to vector<256x128xbf16>
    %c0_9 = arith.constant 0 : index
    %c0_10 = arith.constant 0 : index
    %12 = vector.load %arg5[%c0_9, %c0_10] : memref<128x128xbf16, #tpu.memory_space<vmem>>, vector<128x128xbf16>
    %cst_11 = arith.constant dense<0.000000e+00> : vector<256x128xf32>
    %13 = tpu.matmul %11, %12, %cst_11 {dimension_numbers = #tpu.dot_dimension_numbers<[1], [0], [0], [1], [0, 0, 1, 1], [], []>} : vector<256x128xbf16>, vector<128x128xbf16>, vector<256x128xf32> -> vector<256x128xf32>
    %cst_12 = arith.constant 0.000000e+00 : f32
    %14 = vector.broadcast %cst_12 : f32 to vector<256x128xf32>
    %15 = arith.maximumf %13, %14 : vector<256x128xf32>
    %16 = vector.extract_strided_slice %15 {offsets = [0, 0], sizes = [32, 128], strides = [1, 1]} : vector<256x128xf32> to vector<32x128xf32>
    %17 = vector.extract_strided_slice %15 {offsets = [32, 0], sizes = [32, 128], strides = [1, 1]} : vector<256x128xf32> to vector<32x128xf32>
    %18 = arith.maximumf %16, %17 : vector<32x128xf32>
    %19 = vector.extract_strided_slice %15 {offsets = [64, 0], sizes = [32, 128], strides = [1, 1]} : vector<256x128xf32> to vector<32x128xf32>
    %20 = arith.maximumf %18, %19 : vector<32x128xf32>
    %21 = vector.extract_strided_slice %15 {offsets = [96, 0], sizes = [32, 128], strides = [1, 1]} : vector<256x128xf32> to vector<32x128xf32>
    %22 = arith.maximumf %20, %21 : vector<32x128xf32>
    %23 = vector.extract_strided_slice %15 {offsets = [128, 0], sizes = [32, 128], strides = [1, 1]} : vector<256x128xf32> to vector<32x128xf32>
    %24 = arith.maximumf %22, %23 : vector<32x128xf32>
    %25 = vector.extract_strided_slice %15 {offsets = [160, 0], sizes = [32, 128], strides = [1, 1]} : vector<256x128xf32> to vector<32x128xf32>
    %26 = arith.maximumf %24, %25 : vector<32x128xf32>
    %27 = vector.extract_strided_slice %15 {offsets = [192, 0], sizes = [32, 128], strides = [1, 1]} : vector<256x128xf32> to vector<32x128xf32>
    %28 = arith.maximumf %26, %27 : vector<32x128xf32>
    %29 = vector.extract_strided_slice %15 {offsets = [224, 0], sizes = [32, 128], strides = [1, 1]} : vector<256x128xf32> to vector<32x128xf32>
    %30 = arith.maximumf %28, %29 : vector<32x128xf32>
    %c0_i32 = arith.constant 0 : i32
    %31 = arith.cmpi eq, %arg1, %c0_i32 : i32
    %32 = arith.extui %31 : i1 to i32
    %c0_i32_13 = arith.constant 0 : i32
    %33 = arith.cmpi ne, %32, %c0_i32_13 : i32
    scf.if %33 {
      %c0_16 = arith.constant 0 : index
      %c0_17 = arith.constant 0 : index
      %37 = vector.load %arg6[%c0_16, %c0_17] : memref<32x128xf32, #tpu.memory_space<vmem>>, vector<32x128xf32>
      tpu.vector_store %arg6[%c0_16, %c0_17], %30 {strides = array<i32>} : memref<32x128xf32, #tpu.memory_space<vmem>>, vector<32x128xf32>,
    } else {
    }
    %c0_i32_14 = arith.constant 0 : i32
    %34 = arith.cmpi ne, %arg1, %c0_i32_14 : i32
    %35 = arith.extui %34 : i1 to i32
    %c0_i32_15 = arith.constant 0 : i32
    %36 = arith.cmpi ne, %35, %c0_i32_15 : i32
    scf.if %36 {
      %c0_16 = arith.constant 0 : index
      %c0_17 = arith.constant 0 : index
      %37 = vector.load %arg6[%c0_16, %c0_17] : memref<32x128xf32, #tpu.memory_space<vmem>>, vector<32x128xf32>
      %38 = arith.maximumf %37, %30 : vector<32x128xf32>
      %c0_18 = arith.constant 0 : index
      %c0_19 = arith.constant 0 : index
      %39 = vector.load %arg6[%c0_18, %c0_19] : memref<32x128xf32, #tpu.memory_space<vmem>>, vector<32x128xf32>
      tpu.vector_store %arg6[%c0_18, %c0_19], %38 {strides = array<i32>} : memref<32x128xf32, #tpu.memory_space<vmem>>, vector<32x128xf32>,
    } else {
    }
    return
  }
  func.func @transform_0(%arg0: i32, %arg1: i32) -> (i32, i32, i32) {
    %c0_i32 = arith.constant 0 : i32
    %c0_i32_0 = arith.constant 0 : i32
    return %arg1, %arg0, %c0_i32 : i32, i32, i32
  }
  func.func @transform_1(%arg0: i32, %arg1: i32) -> (i32, i32) {
    %c0_i32 = arith.constant 0 : i32
    %c0_i32_0 = arith.constant 0 : i32
    %c0_i32_1 = arith.constant 0 : i32
    return %c0_i32, %c0_i32_0 : i32, i32
  }
  func.func @transform_2(%arg0: i32, %arg1: i32) -> (i32, i32) {
    %c0_i32 = arith.constant 0 : i32
    %c0_i32_0 = arith.constant 0 : i32
    %c0_i32_1 = arith.constant 0 : i32
    return %c0_i32, %c0_i32_0 : i32, i32
  }
  func.func @transform_3(%arg0: i32, %arg1: i32) -> (i32, i32) {
    %c0_i32 = arith.constant 0 : i32
    %c0_i32_0 = arith.constant 0 : i32
    %c0_i32_1 = arith.constant 0 : i32
    return %c0_i32, %c0_i32_0 : i32, i32
  }
  func.func @transform_4(%arg0: i32, %arg1: i32) -> (i32, i32) {
    %c0_i32 = arith.constant 0 : i32
    %c0_i32_0 = arith.constant 0 : i32
    return %arg0, %c0_i32 : i32, i32
  }
}

</mosaic_0001>

<bundles_post_ra>
// kernel: tpu_custom_call.1
= control target key start
LH: loop header
LB: loop body
LE: loop exit
PB: predicated region body
PF: predicated region fallthrough
CT: control target
= control target key end

     0   :  { %s2503_s0 = inlined_call_operand.hbm [shape: bf16[16,64,128], index: 0, kind: input, shape index: {}]   ;;  %s2504_s1 = inlined_call_operand.hbm [shape: bf16[128,128], index: 1, kind: input, shape index: {}]   ;;  %s2505_s2 = inlined_call_operand.hbm [shape: bf16[128,128], index: 2, kind: input, shape index: {}]   ;;  %s2506_s3 = inlined_call_operand.hbm [shape: bf16[128,128], index: 3, kind: input, shape index: {}]   ;;  %s2507_s4 = inlined_call_operand.hbm [shape: f32[64,128], index: 4, kind: output, shape index: {}]  }
   0x1   :  { %2522 = sst [smem:[#allocation27_spill]] %s2507_s4 }
   0x2   :  { %9 = vsyncpa [#allocation3], 0 }
   0x3   :  { %11 = vsyncpa [#allocation3 + $0x1], 0 }
   0x4   :  { %12 = vsyncpa [#allocation6], 0 }
   0x5   :  { %13 = vsyncpa [#allocation9], 0 }
   0x6   :  { %14 = vsyncpa [#allocation4], 0 }
   0x7   :  { %16 = vsyncpa [#allocation4 + $0x1], 0  ;;  %s2158_s15 = smov 0   ;;  %s2160_s16 = smov 0  }
   0x8   :  { %s2162_s17 = smov 0   ;;  %s2164_s18 = smov 0  }
   0x9   :  { %s2166_s19 = smov 0   ;;  %s2168_s20 = smov 0  }
   0xa   :  { %s2170_s21 = smov 0   ;;  %s2172_s22 = smov 0  }
   0xb   :  { %s2174_s23 = smov 0   ;;  %s2176_s24 = smov 0  }
   0xc   :  { %s2178_s25 = smov 0  }
   0xd LB: > { %2523 = sst [smem:[#allocation18_spill]] %s2078_s15  ;;  %s1419_s26 = sadd.s32 4294967295, %s2118_s25   ;;  %s2118_s25 = sphi %s2178_s25, %s22_s25   ;;  %s2114_s24 = sphi %s2176_s24, %s2565_s24   ;;  %s2110_s23 = sphi %s2174_s23, %s2564_s23   ;;  %s2106_s22 = sphi %s2172_s22, %s2563_s22   ;;  %s2102_s21 = sphi %s2170_s21, %s2562_s21   ;;  %s2098_s20 = sphi %s2168_s20, %s2561_s20   ;;  %s2094_s19 = sphi %s2166_s19, %s2560_s19   ;;  %s2090_s18 = sphi %s2164_s18, %s2559_s18   ;;  %s2086_s17 = sphi %s2162_s17, %s2553_s17   ;;  %s2082_s16 = sphi %s2160_s16, %s2558_s16   ;;  %s2078_s15 = sphi %s2158_s15, %s2557_s15  }
   0xe   : > { %2524 = sst [smem:[#allocation19_spill]] %s2086_s17  ;;  %s1420_s27 = sadd.s32 4294967294, %s2118_s25  }
   0xf   : > { %2525 = sst [smem:[#allocation20_spill]] %s2106_s22  ;;  %s31_s28 = sadd.s32 1, %s2110_s23 }
  0x10   : > { %s34_s29 = sadd.s32 1, %s2114_s24  ;;  %p32_p0 = scmp.ge.s32.totalorder %s31_s28, 2 }
  0x11   : > { %s43_s30 = sadd.s32 1, %s2098_s20  ;;  %p50_p1 = scmp.ne.s32.totalorder %s2098_s20, %s2094_s19 }
  0x12   : > { %p51_p2 = scmp.eq.s32.totalorder %s2118_s25, 0  ;;  %s2567_s28 = smov (%p32_p0, %s31_s28), 0 }
  0x13   : > { %2526 = sst [smem:[#allocation21_spill]] %s2567_s28  ;;  %s2569_s29 = smov (!%p32_p0, %s34_s29), %s2114_s24 }
  0x14   : > { %s38_s5 = ssub.s32 %s2110_s23, %s2567_s28  ;;  %p2224_p3 = por %p51_p2, %p50_p1 }
  0x15   : > { %p36_p4 = scmp.ge.s32.totalorder %s2569_s29, 2  ;;  %p56_p5 = scmp.ne.s32.totalorder %s2094_s19, %s2090_s18 }
  0x16   : > { %s2527_s6 = scalar_select %p2224_p3, 1, 0 }
  0x17   : > { %p2229_p6 = scmp.eq.s32.totalorder %s1419_s26, 0  ;;  %s132_s8 = sadd.s32 1, %s2086_s17 }
  0x18   : > { %s2571_s29 = smov (%p36_p4, %s2569_s29), 0  ;;  %p142_p8 = scmp.ne.s32.totalorder %s2086_s17, %s2082_s16 }
  0x19   : > { %s2528_s7 = scalar_select %p2229_p6, 1, 0 }
  0x1a   : > { %2529 = sst [smem:[#allocation22_spill]] %s2571_s29  ;;  %p2238_p7 = por %p2229_p6, %p56_p5 }
  0x1b   : > { %s39_s10 = ssub.s32 %s2114_s24, %s2571_s29  ;;  %p143_p9 = scmp.eq.s32.totalorder %s1419_s26, 3 }
  0x1c   : > { %s2530_s9 = scalar_select %p2238_p7, 1, 0 }
  0x1d   : > { %s40_s11 = sor.u32 %s39_s10, %s38_s5  ;;  %p130_p10 = scmp.eq.s32.totalorder %s39_s10, 0 }
  0x1e   : > { %p41_p11 = scmp.eq.s32.totalorder %s40_s11, 0  ;;  %p2246_p12 = por %p143_p9, %p142_p8 }
  0x1f   : > { %s2251_s13 = scalar_select %p130_p10, %s2086_s17, %s132_s8  }
  0x20   : > { %s2531_s12 = scalar_select %p2246_p12, 1, 0 }
  0x21   : > { %2533 = sst [smem:[#allocation24_spill]] %s2251_s13  ;;  %p148_p13 = scmp.ne.s32.totalorder %s2082_s16, %s2078_s15 }
  0x22   : > { %2532 = sst [smem:[#allocation23_spill]] %s2531_s12  ;;  %p149_p0 = scmp.eq.s32.totalorder %s1420_s27, 3 }
  0x23   : > { %s2254_s14 = scalar_select %p41_p11, %s2098_s20, %s43_s30  }
  0x24   : > { %p1421_p1 = scmp.ge.s32.totalorder %s2118_s25, 1  ;;  %p156_p2 = scmp.lt.s32.totalorder %s2118_s25, 5 }
  0x25   : > { %2534 = sst [smem:[#allocation25_spill]] %s2254_s14  ;;  %p2260_p4 = por %p149_p0, %p148_p13 }
  0x26   : > { %p2264_p5 = pnand %p1421_p1, %p156_p2  ;;  %s2120_s5 = smov [#allocation5]  }
  0x27   : > { %s2535_s18 = scalar_select %p2260_p4, 1, 0 }
  0x28   : > { %s2537_s26 = scalar_select %p2264_p5, 1, 0 }
  0x29   : > { %2536 = sst [smem:[#allocation26_spill]] %s2535_s18  ;;  %s168_s10 = sshll.u32 %s2120_s5, 4  ;;  %s2270_s10 = int_to_ptr.vmem [resolvable:$true] %s168_s10 }
  0x2a   : > { %p1743_p8 = pneg %p2264_p5  ;;  %s2121_s30 = smov [#allocation7]  }
  0x2b   : > { %s181_s8 = sshll.u32 %s2121_s30, 4  ;;  %s2122_s11 = smov [#allocation8]   ;;  %s2278_s8 = int_to_ptr.vmem [resolvable:$true] %s181_s8 }
  0x2c   : > { %p2274_p9 = pnand %p1743_p8, %p2229_p6  ;;  %s2280_s29 = sshll.u32 %s2122_s11, 4  ;;  %s195_s29 = int_to_ptr.vmem [resolvable:$true] %s2280_s29 }
  0x2d   : > { %s1904_s5 = scalar_lea.hbm %s2504_s1, 1024 }
  0x2e   : > { %p1905_p10 = scmp.ne.s32.totalorder %s2504_s1, %s1904_s5  ;;  %p2290_p11 = pneg %p2274_p9 }
  0x2f   : > { %p1911_p1 = scmp.lt.u32.totalorder %s1904_s5, %s2504_s1 }
  0x30   : > { %p1907_p13 = pnand %p2290_p11, %p1905_p10 }
  0x32   : > { %p1908_p0 = pneg %p1907_p13 }
  0x34   : > { %p1913_p2 = pnand %p1911_p1, %p1908_p0 }
  0x36   : > { %1916 = shalt.err (!%p1913_p2)
}
  0x37   : > { %s1917_s17 = scalar_lea.vmem %s2270_s10, 1024  ;;  %p1925_p6 = scmp.lt.s32.totalorder %s2270_s10, %s2270_s10 }
  0x38   : > { %p1918_p8 = scmp.ne.s32.totalorder %s2270_s10, %s1917_s17  ;;  %p1926_p7 = scmp.lt.s32.totalorder %s1917_s17, %s1917_s17 }
  0x3a   : > { %p1920_p4 = pnand %p1918_p8, %p2290_p11  ;;  %p1927_p10 = por %p1926_p7, %p1925_p6 }
  0x3c   : > { %p1921_p12 = pneg %p1920_p4 }
  0x3e   : > { %p1928_p13 = pnand %p1927_p10, %p1921_p12 }
  0x40   : > { %1931 = shalt.err (!%p1928_p13)
}
  0x41   : > { %s2123_s28 = smov 64   ;;  %s2124_s13 = smov 4  }
  0x42   : > { %1746 = dma.hbm_to_vmem [thread:$0]  (!%p2274_p9), %s2504_s1, 1024, %s2270_s10, [#allocation6], %s2123_s28, %s2123_s28, %s2124_s13  }
  0x43   : > { %s1932_s17 = scalar_lea.hbm %s2505_s2, 1024 }
  0x44   : > { %p1933_p6 = scmp.ne.s32.totalorder %s2505_s2, %s1932_s17  ;;  %p1939_p4 = scmp.lt.u32.totalorder %s1932_s17, %s2505_s2 }
  0x46   : > { %p1935_p7 = pnand %p1933_p6, %p2290_p11 }
  0x48   : > { %p1936_p12 = pneg %p1935_p7 }
  0x4a   : > { %p1941_p0 = pnand %p1939_p4, %p1936_p12 }
  0x4c   : > { %1944 = shalt.err (!%p1941_p0)
}
  0x4d   : > { %s1945_s10 = scalar_lea.vmem %s2278_s8, 1024  ;;  %p1953_p10 = scmp.lt.s32.totalorder %s2278_s8, %s2278_s8 }
  0x4e   : > { %p1946_p1 = scmp.ne.s32.totalorder %s2278_s8, %s1945_s10  ;;  %p1954_p13 = scmp.lt.s32.totalorder %s1945_s10, %s1945_s10 }
  0x50   : > { %p1948_p2 = pnand %p1946_p1, %p2290_p11  ;;  %p1955_p6 = por %p1954_p13, %p1953_p10 }
  0x52   : > { %p1949_p8 = pneg %p1948_p2 }
  0x54   : > { %p1956_p7 = pnand %p1955_p6, %p1949_p8 }
  0x56   : > { %1959 = shalt.err (!%p1956_p7)
}
  0x57   : > { %1749 = dma.hbm_to_vmem [thread:$0]  (!%p2274_p9), %s2505_s2, 1024, %s2278_s8, [#allocation6], %s2123_s28, %s2123_s28, %s2124_s13  }
  0x58   : > { %s1960_s14 = scalar_lea.hbm %s2506_s3, 1024 }
  0x59   : > { %p1961_p12 = scmp.ne.s32.totalorder %s2506_s3, %s1960_s14  ;;  %p1967_p1 = scmp.lt.u32.totalorder %s1960_s14, %s2506_s3 }
  0x5b   : > { %p1963_p4 = pnand %p1961_p12, %p2290_p11 }
  0x5d   : > { %p1964_p0 = pneg %p1963_p4 }
  0x5f   : > { %p1969_p2 = pnand %p1967_p1, %p1964_p0 }
  0x61   : > { %1972 = shalt.err (!%p1969_p2)
}
  0x62   : > { %s1973_s10 = scalar_lea.vmem %s195_s29, 1024  ;;  %p1981_p6 = scmp.lt.s32.totalorder %s195_s29, %s195_s29 }
  0x63   : > { %p1974_p8 = scmp.ne.s32.totalorder %s195_s29, %s1973_s10  ;;  %p1982_p7 = scmp.lt.s32.totalorder %s1973_s10, %s1973_s10 }
  0x65   : > { %p1976_p10 = pnand %p1974_p8, %p2290_p11  ;;  %p1983_p5 = por %p1982_p7, %p1981_p6 }
  0x67   : > { %p1977_p13 = pneg %p1976_p10 }
  0x69   : > { %p1984_p3 = pnand %p1983_p5, %p1977_p13 }
  0x6b   : > { %1987 = shalt.err (!%p1984_p3)
}
  0x6c   : > { %1752 = dma.hbm_to_vmem [thread:$0]  (!%p2274_p9), %s2506_s3, 1024, %s195_s29, [#allocation9], %s2123_s28, %s2123_s28, %s2124_s13  }
  0x6d   : > { %p1425_p12 = scmp.ge.s32.totalorder %s2118_s25, 4 }
  0x6f   : > { %204 = sbr.rel (%p1425_p12) target bundleno = 135 (0x87), region = 28 }
  0x76   : > { %s208_s18 = sand.u32 1, %s2098_s20   ;;  %s1428_s15 = sshll.u32 %s2114_s24, 2 }
  0x77   : > { %s1426_s27 = sshll.u32 %s208_s18, 7  ;;  %s1486_s22 = sshll.u32 %s2110_s23, 6 }
  0x78   : > { %s219_s12 = sadd.s32 %s1486_s22, %s1428_s15  ;;  %s212_s14 = scalar_lea.vmem [#allocation2], %s1426_s27 }
  0x79   : > { %s234_s29 = sshll.u32 %s212_s14, 4  ;;  %s1430_s28 = sshll.u32 %s219_s12, 6  ;;  %s235_s29 = int_to_ptr.vmem [resolvable:$true] %s234_s29 }
  0x7a   : > { %p2540_p3 = scmp.ne.s32.totalorder %s2527_s6, 0  ;;  %s2125_s5 = smov 512  }
  0x7b   : > { %s2126_s11 = smov 256   ;;  %s2127_s17 = smov 4  }
  0x7c   : > { %s1726_s13 = scalar_select %p2540_p3, [#allocation0], [#allocation13] }
  0x7d   : > { %1727 = sst [smem:[#allocation12]] (%p2540_p3), %s2125_s5  ;;  %s2128_s10 = smov 64  }
  0x7e   : > { %s226_s30 = sld [smem:[%s1726_s13]]   ;;  %s221_s15 = scalar_lea.hbm %s2503_s0, %s1430_s28 }
  0x7f   : > { %1728 = sst [smem:[#allocation12 + $0x1]] (%p2540_p3), %s2126_s11  ;;  %s209_s12 = scalar_lea.sflag [#allocation3], %s208_s18 }
  0x80   : > { %1729 = sst [smem:[#allocation12 + $0x2]] (%p2540_p3), %s2127_s17  ;;  %s2129_s14 = smov [#allocation11]  }
  0x81   : > { %1730 = sst [smem:[#allocation12 + $0x3]] (%p2540_p3), %s2128_s10 }
  0x82   : > { %1731 = sst [smem:[#allocation12 + $0x4]] (%p2540_p3), %s2128_s10 }
  0x83   : > { %1732 = sst [smem:[#allocation12 + $0x5]] (%p2540_p3), %s2127_s17 }
  0x84   : > { %s1431_s27 = sshll.u32 %s226_s30, 26 }
  0x85   : > { %s1432_s22 = sadd.s32 134217728, %s1431_s27 }
  0x86   : > { %1733 = dma.general (%p2540_p3), %s221_s15, 2048, %s235_s29, %s209_s12, %s2129_s14, [#allocation12], %s1432_s22, 0  }
  0x87 PF: > { %p2541_p5 = scmp.ne.s32.totalorder %s2537_s26, 0 }
  0x88   : > { %s261_s13 = sand.u32 (!%p2541_p5), 1, %s2094_s19   ;;  %p2542_p9 = scmp.ne.s32.totalorder (!%p2541_p5), %s2530_s9, 0 }
  0x89   : > { %259 = sbr.rel (%p2541_p5) target bundleno = 938 (0x3aa), region = 36  ;;  %s1434_s5 = sshll.u32 (!%p2541_p5), %s261_s13, 7 }
  0x8a   : > { %s262_s11 = scalar_lea.sflag (!%p2541_p5), [#allocation3], %s261_s13  ;;  %s2388_s28 = scalar_lea.vmem (!%p2541_p5), [#allocation2], %s1434_s5 }
  0x90   : > { %2061 = dma.done.wait (%p2542_p9), %s262_s11, 2048  }
  0x91   : > { %2063 = vsyncadd (%p2542_p9), %s262_s11, 4294965248  ;;  %p2543_p11 = scmp.ne.s32.totalorder %s2528_s7, 0 }
  0x93   : > { %2065 = dma.done.wait (%p2543_p11), [#allocation6], 2048  }
  0x94   : > { %2067 = vsyncadd (%p2543_p11), [#allocation6], 4294965248 }
  0x95   : > { %2069 = dma.done.wait (%p2543_p11), [#allocation9], 1024  }
  0x96   : > { %2071 = vsyncadd (%p2543_p11), [#allocation9], 4294966272  ;;  %s299_s6 = sand.u32 1, %s2082_s16   ;;  %v1864_v0 = vld [vmem:[#allocation5] sm:$0xff]   ;;  %v1865_v1 = vld [vmem:[#allocation5 + $0x8] sm:$0xff]   ;;  %p1479_p4 = scmp.ne.s32.totalorder %s2102_s21, 0 }
  0x97   : > { %s2405_s26 = sshll.u32 %s299_s6, 5  ;;  %1560 = vmatprep.subr.bf16.mxu0 %v1864_v0  ;;  %1704 = vmatprep.subr.bf16.mxu1 %v1864_v0  ;;  %v1866_v2 = vld [vmem:[#allocation5 + $0x10] sm:$0xff]   ;;  %v1867_v3 = vld [vmem:[#allocation5 + $0x18] sm:$0xff]   ;;  %v1872_v4 = vld [vmem:[%s2388_s28] sm:$0xff]  }
  0x98   : > { %1561 = vmatpush3.bf16.msra.mxu0 %v1864_v0  ;;  %1712 = vmatpush3.bf16.msra.mxu1 %v1864_v0  ;;  %v1868_v5 = vld [vmem:[#allocation5 + $0x20] sm:$0xff]   ;;  %v1869_v6 = vld [vmem:[#allocation5 + $0x28] sm:$0xff]   ;;  %v1870_v8 = vld [vmem:[#allocation5 + $0x30] sm:$0xff]   ;;  %s301_s7 = scalar_lea.vmem [#allocation10], %s2405_s26 }
  0x99   : > { %1562 = vmatprep.subr.bf16.mxu0 %v1865_v1  ;;  %1705 = vmatprep.subr.bf16.mxu1 %v1865_v1  ;;  %v1880_v7 = vld [vmem:[%s2388_s28 + $0x40] sm:$0xff]   ;;  %v1871_v9 = vld [vmem:[#allocation5 + $0x38] sm:$0xff]   ;;  %v1873_v10 = vld [vmem:[%s2388_s28 + $0x8] sm:$0xff]  }
  0x9a   : > { %1576 = vmatprep.mubr.bf16.mxu0 %v1872_v4  ;;  %1592 = vmatprep.mubr.bf16.mxu1 %v1880_v7  ;;  %v1881_v11 = vld [vmem:[%s2388_s28 + $0x48] sm:$0xff]   ;;  %v1888_v12 = vld [vmem:[#allocation7] sm:$0xff]   ;;  %v1874_v13 = vld [vmem:[%s2388_s28 + $0x10] sm:$0xff]  }
  0x9b   : > { %v1882_v14 = vld [vmem:[%s2388_s28 + $0x50] sm:$0xff]   ;;  %v1889_v15 = vld [vmem:[#allocation7 + $0x8] sm:$0xff]   ;;  %v1875_v17 = vld [vmem:[%s2388_s28 + $0x18] sm:$0xff]  }
  0x9c   : > { %1563 = vmatpush3.bf16.msra.mxu0 %v1865_v1  ;;  %1713 = vmatpush3.bf16.msra.mxu1 %v1865_v1  ;;  %v1890_v16 = vld [vmem:[#allocation7 + $0x10] sm:$0xff]   ;;  %v1883_v18 = vld [vmem:[%s2388_s28 + $0x58] sm:$0xff]   ;;  %v1876_v19 = vld [vmem:[%s2388_s28 + $0x20] sm:$0xff]  }
  0x9d   : > { %1564 = vmatprep.subr.bf16.mxu0 %v1866_v2  ;;  %1706 = vmatprep.subr.bf16.mxu1 %v1866_v2  ;;  %v1884_v20 = vld [vmem:[%s2388_s28 + $0x60] sm:$0xff]   ;;  %v1891_v21 = vld [vmem:[#allocation7 + $0x18] sm:$0xff]   ;;  %v1877_v23 = vld [vmem:[%s2388_s28 + $0x28] sm:$0xff]  }
  0x9e   : > { %v1892_v22 = vld [vmem:[#allocation7 + $0x20] sm:$0xff]   ;;  %v1885_v24 = vld [vmem:[%s2388_s28 + $0x68] sm:$0xff]   ;;  %v1878_v25 = vld [vmem:[%s2388_s28 + $0x30] sm:$0xff]  }
  0x9f   : > { %v1886_v26 = vld [vmem:[%s2388_s28 + $0x70] sm:$0xff]   ;;  %v1893_v27 = vld [vmem:[#allocation7 + $0x28] sm:$0xff]   ;;  %v1879_v28 = vld [vmem:[%s2388_s28 + $0x38] sm:$0xff]  }
  0xa0   : > { %1565 = vmatpush3.bf16.msra.mxu0 %v1866_v2  ;;  %1714 = vmatpush3.bf16.msra.mxu1 %v1866_v2  ;;  %v1887_v29 = vld [vmem:[%s2388_s28 + $0x78] sm:$0xff]   ;;  %v1894_v30 = vld [vmem:[#allocation7 + $0x30] sm:$0xff]   ;;  %v1896_v32 = vld [vmem:[#allocation8] sm:$0xff]  }
  0xa1   : > { %1566 = vmatprep.subr.bf16.mxu0 %v1867_v3  ;;  %1707 = vmatprep.subr.bf16.mxu1 %v1867_v3  ;;  %v1895_v31 = vld [vmem:[#allocation7 + $0x38] sm:$0xff]   ;;  %v1897_v33 = vld [vmem:[#allocation8 + $0x8] sm:$0xff]   ;;  %v1898_v34 = vld [vmem:[#allocation8 + $0x10] sm:$0xff]  }
  0xa2   : > { %v1899_v35 = vld [vmem:[#allocation8 + $0x18] sm:$0xff]   ;;  %v1900_v36 = vld [vmem:[#allocation8 + $0x20] sm:$0xff]   ;;  %v1901_v37 = vld [vmem:[#allocation8 + $0x28] sm:$0xff]  }
  0xa4   : > { %1567 = vmatpush3.bf16.msra.mxu0 %v1867_v3  ;;  %1715 = vmatpush3.bf16.msra.mxu1 %v1867_v3 }
  0xa5   : > { %1568 = vmatprep.subr.bf16.mxu0 %v1868_v5  ;;  %1708 = vmatprep.subr.bf16.mxu1 %v1868_v5 }
  0xa8   : > { %1569 = vmatpush3.bf16.msra.mxu0 %v1868_v5  ;;  %1716 = vmatpush3.bf16.msra.mxu1 %v1868_v5 }
  0xa9   : > { %1570 = vmatprep.subr.bf16.mxu0 %v1869_v6  ;;  %1709 = vmatprep.subr.bf16.mxu1 %v1869_v6 }
  0xac   : > { %1571 = vmatpush3.bf16.msra.mxu0 %v1869_v6  ;;  %1717 = vmatpush3.bf16.msra.mxu1 %v1869_v6 }
  0xad   : > { %1572 = vmatprep.subr.bf16.mxu0 %v1870_v8  ;;  %1710 = vmatprep.subr.bf16.mxu1 %v1870_v8 }
  0xb0   : > { %1573 = vmatpush3.bf16.msra.mxu0 %v1870_v8  ;;  %1718 = vmatpush3.bf16.msra.mxu1 %v1870_v8 }
  0xb1   : > { %1574 = vmatprep.subr.bf16.mxu0 %v1871_v9  ;;  %1711 = vmatprep.subr.bf16.mxu1 %v1871_v9 }
  0xb4   : > { %1575 = vmatpush3.bf16.msra.mxu0 %v1871_v9  ;;  %1719 = vmatpush3.bf16.msra.mxu1 %v1871_v9 }
  0xb5   : > { %1608 = vmatprep.subr.bf16.mxu1 %v1888_v12  ;;  %1656 = vmatprep.subr.bf16.mxu0 %v1896_v32 }
  0xb7   : > { %1577 = vmatmul.mubr.bf16.vlgmr.msra.gmra.mrb[0].mxu0 %v1873_v10  ;;  %1593 = vmatmul.mubr.bf16.vlgmr.msra.gmra.mrb[0].mxu1 %v1881_v11 }
  0xb8   : > { %1580 = vmatprep.mubr.bf16.mxu0 %v1874_v13  ;;  %1596 = vmatprep.mubr.bf16.mxu1 %v1882_v14 }
  0xb9   : > { %1609 = vmatpush3.bf16.msra.mxu1 %v1888_v12  ;;  %1657 = vmatpush3.bf16.msra.mxu0 %v1896_v32 }
  0xba   : > { %1610 = vmatprep.subr.bf16.mxu1 %v1889_v15  ;;  %1658 = vmatprep.subr.bf16.mxu0 %v1897_v33 }
  0xbd   : > { %1611 = vmatpush3.bf16.msra.mxu1 %v1889_v15  ;;  %1659 = vmatpush3.bf16.msra.mxu0 %v1897_v33 }
  0xbe   : > { %1612 = vmatprep.subr.bf16.mxu1 %v1890_v16  ;;  %1660 = vmatprep.subr.bf16.mxu0 %v1898_v34 }
  0xbf   : > { %1581 = vmatmul.mubr.bf16.gmra.mrb[4].mxu0 %v1875_v17  ;;  %1597 = vmatmul.mubr.bf16.gmra.mrb[4].mxu1 %v1883_v18 }
  0xc0   : > { %1584 = vmatprep.mubr.bf16.mxu0 %v1876_v19  ;;  %1600 = vmatprep.mubr.bf16.mxu1 %v1884_v20 }
  0xc1   : > { %1613 = vmatpush3.bf16.msra.mxu1 %v1890_v16  ;;  %1661 = vmatpush3.bf16.msra.mxu0 %v1898_v34 }
  0xc2   : > { %1614 = vmatprep.subr.bf16.mxu1 %v1891_v21  ;;  %1662 = vmatprep.subr.bf16.mxu0 %v1899_v35 }
  0xc5   : > { %1615 = vmatpush3.bf16.msra.mxu1 %v1891_v21  ;;  %1663 = vmatpush3.bf16.msra.mxu0 %v1899_v35 }
  0xc6   : > { %1616 = vmatprep.subr.bf16.mxu1 %v1892_v22  ;;  %1664 = vmatprep.subr.bf16.mxu0 %v1900_v36 }
  0xc7   : > { %1585 = vmatmul.mubr.bf16.gmra.mrb[8].mxu0 %v1877_v23  ;;  %1601 = vmatmul.mubr.bf16.gmra.mrb[8].mxu1 %v1885_v24 }
  0xc8   : > { %1588 = vmatprep.mubr.bf16.mxu0 %v1878_v25  ;;  %1604 = vmatprep.mubr.bf16.mxu1 %v1886_v26 }
  0xc9   : > { %1617 = vmatpush3.bf16.msra.mxu1 %v1892_v22  ;;  %1665 = vmatpush3.bf16.msra.mxu0 %v1900_v36 }
  0xca   : > { %1618 = vmatprep.subr.bf16.mxu1 %v1893_v27  ;;  %1666 = vmatprep.subr.bf16.mxu0 %v1901_v37 }
  0xcd   : > { %1619 = vmatpush3.bf16.msra.mxu1 %v1893_v27  ;;  %1667 = vmatpush3.bf16.msra.mxu0 %v1901_v37 }
  0xce   : > { %1620 = vmatprep.subr.bf16.mxu1 %v1894_v30 }
  0xcf   : > { %1589 = vmatmul.mubr.bf16.gmra.mrb[12].mxu0 %v1879_v28  ;;  %1605 = vmatmul.mubr.bf16.gmra.mrb[12].mxu1 %v1887_v29 }
  0xd1   : > { %1621 = vmatpush3.bf16.msra.mxu1 %v1894_v30 }
  0xd2   : > { %1622 = vmatprep.subr.bf16.mxu1 %v1895_v31 }
  0xd5   : > { %1623 = vmatpush3.bf16.msra.mxu1 %v1895_v31 }
 0x18a   : > { %v1578_v38 = vpop.f32.mrb[0].mxu0  ;;  %v1594_v39 = vpop.f32.mrb[0].mxu1 }
 0x18b   : > { %v532_v40 = vpop.f32.mrb[1].mxu0  ;;  %v677_v41 = vmax.f32 %v1594_v39, 0.0  ;;  %v596_v42 = vpop.f32.mrb[1].mxu1  ;;  %v661_v46 = vmax.f32 %v1578_v38, 0.0 }
 0x18c   : > { %v1579_v43 = vpop.f32.mrb[2].mxu0  ;;  %v675_v44 = vmax.f32 %v596_v42, 0.0  ;;  %v1595_v45 = vpop.f32.mrb[2].mxu1  ;;  %v659_v51 = vmax.f32 %v532_v40, 0.0 }
 0x18d   : > { %v662_v47 = vmax.f32 %v1579_v43, 0.0  ;;  %v535_v48 = vpop.f32.mrb[3].mxu0  ;;  %v678_v49 = vmax.f32 %v1595_v45, 0.0  ;;  %v599_v50 = vpop.f32.mrb[3].mxu1 }
 0x18e   : > { %v660_v52 = vmax.f32 %v535_v48, 0.0  ;;  %v676_v53 = vmax.f32 %v599_v50, 0.0 }
 0x18f   : > { %v692_v54 = vpack.c.bf16 %v662_v47, %v661_v46  ;;  %v2423_v55 = vpack.c.bf16 %v678_v49, %v677_v41 }
 0x190   : > { %v691_v56 = vpack.c.bf16 %v660_v52, %v659_v51  ;;  %v2425_v57 = vpack.c.bf16 %v676_v53, %v675_v44 }
 0x192   : > { %v1582_v58 = vpop.f32.mrb[4].mxu0  ;;  %1624 = vmatprep.mubr.bf16.mxu1 %v691_v56  ;;  %v1598_v59 = vpop.f32.mrb[4].mxu1  ;;  %v1903_v56 = vld [vmem:[#allocation8 + $0x38] sm:$0xff]  }
 0x193   : > { %v548_v60 = vpop.f32.mrb[5].mxu0  ;;  %1625 = vmatmul.mubr.bf16.vlgmr.msra.gmra.mrb[16].mxu1 %v692_v54  ;;  %v681_v61 = vmax.f32 %v1598_v59, 0.0  ;;  %v612_v62 = vpop.f32.mrb[5].mxu1  ;;  %v665_v2 = vmax.f32 %v1582_v58, 0.0  ;;  %v1902_v54 = vld [vmem:[#allocation8 + $0x30] sm:$0xff]  }
 0x194   : > { %v1583_v63 = vpop.f32.mrb[6].mxu0  ;;  %v679_v0 = vmax.f32 %v612_v62, 0.0  ;;  %v1599_v1 = vpop.f32.mrb[6].mxu1  ;;  %v663_v7 = vmax.f32 %v548_v60, 0.0  ;;  %1668 = vmatprep.subr.bf16.mxu0 %v1902_v54 }
 0x195   : > { %v666_v3 = vmax.f32 %v1583_v63, 0.0  ;;  %v551_v4 = vpop.f32.mrb[7].mxu0  ;;  %v682_v5 = vmax.f32 %v1599_v1, 0.0  ;;  %v615_v6 = vpop.f32.mrb[7].mxu1  ;;  %1669 = vmatpush3.bf16.msra.mxu0 %v1902_v54 }
 0x196   : > { %v664_v8 = vmax.f32 %v551_v4, 0.0  ;;  %v680_v9 = vmax.f32 %v615_v6, 0.0  ;;  %1670 = vmatprep.subr.bf16.mxu0 %v1903_v56 }
 0x197   : > { %v694_v10 = vpack.c.bf16 %v666_v3, %v665_v2  ;;  %v702_v11 = vpack.c.bf16 %v682_v5, %v681_v61 }
 0x198   : > { %v693_v12 = vpack.c.bf16 %v664_v8, %v663_v7  ;;  %v701_v13 = vpack.c.bf16 %v680_v9, %v679_v0 }
 0x199   : > { %1671 = vmatpush3.bf16.msra.mxu0 %v1903_v56 }
 0x19a   : > { %v1586_v14 = vpop.f32.mrb[8].mxu0  ;;  %1628 = vmatprep.mubr.bf16.mxu1 %v693_v12  ;;  %v1602_v15 = vpop.f32.mrb[8].mxu1 }
 0x19b   : > { %v564_v16 = vpop.f32.mrb[9].mxu0  ;;  %1629 = vmatmul.mubr.bf16.gmra.mrb[20].mxu1 %v694_v10  ;;  %v685_v17 = vmax.f32 %v1602_v15, 0.0  ;;  %v628_v18 = vpop.f32.mrb[9].mxu1  ;;  %v669_v22 = vmax.f32 %v1586_v14, 0.0 }
 0x19c   : > { %v1587_v19 = vpop.f32.mrb[10].mxu0  ;;  %v683_v20 = vmax.f32 %v628_v18, 0.0  ;;  %v1603_v21 = vpop.f32.mrb[10].mxu1  ;;  %v667_v27 = vmax.f32 %v564_v16, 0.0 }
 0x19d   : > { %v670_v23 = vmax.f32 %v1587_v19, 0.0  ;;  %v567_v24 = vpop.f32.mrb[11].mxu0  ;;  %v686_v25 = vmax.f32 %v1603_v21, 0.0  ;;  %v631_v26 = vpop.f32.mrb[11].mxu1 }
 0x19e   : > { %v668_v28 = vmax.f32 %v567_v24, 0.0  ;;  %v684_v29 = vmax.f32 %v631_v26, 0.0 }
 0x19f   : > { %v696_v30 = vpack.c.bf16 %v670_v23, %v669_v22  ;;  %v704_v31 = vpack.c.bf16 %v686_v25, %v685_v17 }
 0x1a0   : > { %v695_v32 = vpack.c.bf16 %v668_v28, %v667_v27  ;;  %v703_v33 = vpack.c.bf16 %v684_v29, %v683_v20 }
 0x1a2   : > { %v1590_v34 = vpop.f32.mrb[12].mxu0  ;;  %1632 = vmatprep.mubr.bf16.mxu1 %v695_v32  ;;  %v1606_v35 = vpop.f32.mrb[12].mxu1 }
 0x1a3   : > { %v580_v36 = vpop.f32.mrb[13].mxu0  ;;  %1633 = vmatmul.mubr.bf16.gmra.mrb[24].mxu1 %v696_v30  ;;  %v689_v37 = vmax.f32 %v1606_v35, 0.0  ;;  %v644_v38 = vpop.f32.mrb[13].mxu1  ;;  %v673_v42 = vmax.f32 %v1590_v34, 0.0 }
 0x1a4   : > { %v1591_v39 = vpop.f32.mrb[14].mxu0  ;;  %v687_v40 = vmax.f32 %v644_v38, 0.0  ;;  %v1607_v41 = vpop.f32.mrb[14].mxu1  ;;  %v671_v47 = vmax.f32 %v580_v36, 0.0 }
 0x1a5   : > { %v674_v43 = vmax.f32 %v1591_v39, 0.0  ;;  %v583_v44 = vpop.f32.mrb[15].mxu0  ;;  %v690_v45 = vmax.f32 %v1607_v41, 0.0  ;;  %v647_v46 = vpop.f32.mrb[15].mxu1 }
 0x1a6   : > { %v672_v48 = vmax.f32 %v583_v44, 0.0  ;;  %v688_v49 = vmax.f32 %v647_v46, 0.0 }
 0x1a7   : > { %v698_v50 = vpack.c.bf16 %v674_v43, %v673_v42  ;;  %v706_v51 = vpack.c.bf16 %v690_v45, %v689_v37 }
 0x1a8   : > { %v697_v52 = vpack.c.bf16 %v672_v48, %v671_v47  ;;  %v705_v53 = vpack.c.bf16 %v688_v49, %v687_v40 }
 0x1aa   : > { %1636 = vmatprep.mubr.bf16.mxu1 %v697_v52 }
 0x1ab   : > { %1637 = vmatmul.mubr.bf16.gmra.mrb[28].mxu1 %v698_v50 }
 0x1ac   : > { %1640 = vmatprep.mubr.bf16.mxu1 %v2425_v57 }
 0x1b3   : > { %1641 = vmatmul.mubr.bf16.gmra.mrb[32].mxu1 %v2423_v55 }
 0x1b4   : > { %1644 = vmatprep.mubr.bf16.mxu1 %v701_v13 }
 0x1bb   : > { %1645 = vmatmul.mubr.bf16.gmra.mrb[36].mxu1 %v702_v11 }
 0x1bc   : > { %1648 = vmatprep.mubr.bf16.mxu1 %v703_v33 }
 0x1c3   : > { %1649 = vmatmul.mubr.bf16.gmra.mrb[40].mxu1 %v704_v31 }
 0x1c4   : > { %1652 = vmatprep.mubr.bf16.mxu1 %v705_v53 }
 0x1cb   : > { %1653 = vmatmul.mubr.bf16.gmra.mrb[44].mxu1 %v706_v51 }
 0x266   : > { %v1626_v58 = vpop.f32.mrb[16].mxu1 }
 0x267   : > { %v805_v59 = vpop.f32.mrb[17].mxu1  ;;  %v934_v61 = vmax.f32 %v1626_v58, 0.0 }
 0x268   : > { %v1627_v60 = vpop.f32.mrb[18].mxu1  ;;  %v932_v63 = vmax.f32 %v805_v59, 0.0 }
 0x269   : > { %v935_v62 = vmax.f32 %v1627_v60, 0.0  ;;  %v808_v57 = vpop.f32.mrb[19].mxu1 }
 0x26a   : > { %v933_v55 = vmax.f32 %v808_v57, 0.0 }
 0x26b   : > { %v965_v0 = vpack.c.bf16 %v935_v62, %v934_v61 }
 0x26c   : > { %v964_v1 = vpack.c.bf16 %v933_v55, %v932_v63 }
 0x26e   : > { %v1630_v2 = vpop.f32.mrb[20].mxu1  ;;  %1672 = vmatprep.mubr.bf16.mxu0 %v964_v1 }
 0x26f   : > { %v821_v3 = vpop.f32.mrb[21].mxu1  ;;  %1673 = vmatmul.mubr.bf16.vlgmr.msra.gmra.mrb[16].mxu0 %v965_v0  ;;  %v938_v5 = vmax.f32 %v1630_v2, 0.0 }
 0x270   : > { %v1631_v4 = vpop.f32.mrb[22].mxu1  ;;  %v936_v8 = vmax.f32 %v821_v3, 0.0 }
 0x271   : > { %v939_v6 = vmax.f32 %v1631_v4, 0.0  ;;  %v824_v7 = vpop.f32.mrb[23].mxu1 }
 0x272   : > { %v937_v9 = vmax.f32 %v824_v7, 0.0 }
 0x273   : > { %v967_v10 = vpack.c.bf16 %v939_v6, %v938_v5 }
 0x274   : > { %v966_v11 = vpack.c.bf16 %v937_v9, %v936_v8 }
 0x276   : > { %v1634_v12 = vpop.f32.mrb[24].mxu1  ;;  %1676 = vmatprep.mubr.bf16.mxu0 %v966_v11 }
 0x277   : > { %v837_v13 = vpop.f32.mrb[25].mxu1  ;;  %1677 = vmatmul.mubr.bf16.gmra.mrb[20].mxu0 %v967_v10  ;;  %v942_v15 = vmax.f32 %v1634_v12, 0.0 }
 0x278   : > { %v1635_v14 = vpop.f32.mrb[26].mxu1  ;;  %v940_v18 = vmax.f32 %v837_v13, 0.0 }
 0x279   : > { %v943_v16 = vmax.f32 %v1635_v14, 0.0  ;;  %v840_v17 = vpop.f32.mrb[27].mxu1 }
 0x27a   : > { %v941_v19 = vmax.f32 %v840_v17, 0.0 }
 0x27b   : > { %v969_v20 = vpack.c.bf16 %v943_v16, %v942_v15 }
 0x27c   : > { %v968_v21 = vpack.c.bf16 %v941_v19, %v940_v18 }
 0x27e   : > { %v1638_v22 = vpop.f32.mrb[28].mxu1  ;;  %1680 = vmatprep.mubr.bf16.mxu0 %v968_v21 }
 0x27f   : > { %v853_v23 = vpop.f32.mrb[29].mxu1  ;;  %1681 = vmatmul.mubr.bf16.gmra.mrb[24].mxu0 %v969_v20  ;;  %v946_v25 = vmax.f32 %v1638_v22, 0.0 }
 0x280   : > { %v1639_v24 = vpop.f32.mrb[30].mxu1  ;;  %v944_v28 = vmax.f32 %v853_v23, 0.0 }
 0x281   : > { %v947_v26 = vmax.f32 %v1639_v24, 0.0  ;;  %v856_v27 = vpop.f32.mrb[31].mxu1 }
 0x282   : > { %v945_v29 = vmax.f32 %v856_v27, 0.0 }
 0x283   : > { %v971_v30 = vpack.c.bf16 %v947_v26, %v946_v25 }
 0x284   : > { %v970_v31 = vpack.c.bf16 %v945_v29, %v944_v28 }
 0x286   : > { %v1642_v32 = vpop.f32.mrb[32].mxu1  ;;  %1684 = vmatprep.mubr.bf16.mxu0 %v970_v31 }
 0x287   : > { %v869_v33 = vpop.f32.mrb[33].mxu1  ;;  %1685 = vmatmul.mubr.bf16.gmra.mrb[28].mxu0 %v971_v30  ;;  %v950_v35 = vmax.f32 %v1642_v32, 0.0 }
 0x288   : > { %v1643_v34 = vpop.f32.mrb[34].mxu1  ;;  %v948_v38 = vmax.f32 %v869_v33, 0.0 }
 0x289   : > { %v951_v36 = vmax.f32 %v1643_v34, 0.0  ;;  %v872_v37 = vpop.f32.mrb[35].mxu1 }
 0x28a   : > { %v949_v39 = vmax.f32 %v872_v37, 0.0 }
 0x28b   : > { %v973_v40 = vpack.c.bf16 %v951_v36, %v950_v35 }
 0x28c   : > { %v972_v41 = vpack.c.bf16 %v949_v39, %v948_v38 }
 0x28e   : > { %v1646_v42 = vpop.f32.mrb[36].mxu1  ;;  %1688 = vmatprep.mubr.bf16.mxu0 %v972_v41 }
 0x28f   : > { %v885_v43 = vpop.f32.mrb[37].mxu1  ;;  %1689 = vmatmul.mubr.bf16.gmra.mrb[32].mxu0 %v973_v40  ;;  %v954_v45 = vmax.f32 %v1646_v42, 0.0 }
 0x290   : > { %v1647_v44 = vpop.f32.mrb[38].mxu1  ;;  %v952_v48 = vmax.f32 %v885_v43, 0.0 }
 0x291   : > { %v955_v46 = vmax.f32 %v1647_v44, 0.0  ;;  %v888_v47 = vpop.f32.mrb[39].mxu1 }
 0x292   : > { %v953_v49 = vmax.f32 %v888_v47, 0.0 }
 0x293   : > { %v975_v50 = vpack.c.bf16 %v955_v46, %v954_v45 }
 0x294   : > { %v974_v51 = vpack.c.bf16 %v953_v49, %v952_v48 }
 0x296   : > { %v1650_v52 = vpop.f32.mrb[40].mxu1  ;;  %1692 = vmatprep.mubr.bf16.mxu0 %v974_v51 }
 0x297   : > { %v901_v53 = vpop.f32.mrb[41].mxu1  ;;  %1693 = vmatmul.mubr.bf16.gmra.mrb[36].mxu0 %v975_v50  ;;  %v958_v56 = vmax.f32 %v1650_v52, 0.0 }
 0x298   : > { %v1651_v54 = vpop.f32.mrb[42].mxu1  ;;  %v956_v60 = vmax.f32 %v901_v53, 0.0 }
 0x299   : > { %v959_v58 = vmax.f32 %v1651_v54, 0.0  ;;  %v904_v59 = vpop.f32.mrb[43].mxu1 }
 0x29a   : > { %v957_v61 = vmax.f32 %v904_v59, 0.0 }
 0x29b   : > { %v977_v62 = vpack.c.bf16 %v959_v58, %v958_v56 }
 0x29c   : > { %v976_v57 = vpack.c.bf16 %v957_v61, %v956_v60 }
 0x29e   : > { %v1654_v63 = vpop.f32.mrb[44].mxu1  ;;  %1696 = vmatprep.mubr.bf16.mxu0 %v976_v57 }
 0x29f   : > { %v917_v55 = vpop.f32.mrb[45].mxu1  ;;  %1697 = vmatmul.mubr.bf16.gmra.mrb[40].mxu0 %v977_v62  ;;  %v962_v1 = vmax.f32 %v1654_v63, 0.0 }
 0x2a0   : > { %v1655_v0 = vpop.f32.mrb[46].mxu1  ;;  %v960_v4 = vmax.f32 %v917_v55, 0.0 }
 0x2a1   : > { %v963_v2 = vmax.f32 %v1655_v0, 0.0  ;;  %v920_v3 = vpop.f32.mrb[47].mxu1 }
 0x2a2   : > { %v961_v5 = vmax.f32 %v920_v3, 0.0 }
 0x2a3   : > { %v979_v6 = vpack.c.bf16 %v963_v2, %v962_v1 }
 0x2a4   : > { %v978_v7 = vpack.c.bf16 %v961_v5, %v960_v4 }
 0x2a6   : > { %1700 = vmatprep.mubr.bf16.mxu0 %v978_v7 }
 0x2a7   : > { %1701 = vmatmul.mubr.bf16.gmra.mrb[44].mxu0 %v979_v6 }
 0x342   : > { %v1674_v8 = vpop.f32.mrb[16].mxu0 }
 0x343   : > { %v1078_v9 = vpop.f32.mrb[17].mxu0  ;;  %v1207_v13 = vmax.f32 %v1674_v8, 0.0 }
 0x344   : > { %v1675_v10 = vpop.f32.mrb[18].mxu0  ;;  %v1205_v16 = vmax.f32 %v1078_v9, 0.0 }
 0x345   : > { %v1081_v11 = vpop.f32.mrb[19].mxu0  ;;  %v1208_v19 = vmax.f32 %v1675_v10, 0.0 }
 0x346   : > { %v1206_v23 = vmax.f32 %v1081_v11, 0.0 }
 0x34a   : > { %v1678_v12 = vpop.f32.mrb[20].mxu0 }
 0x34b   : > { %v1211_v14 = vmax.f32 %v1678_v12, 0.0  ;;  %v1094_v15 = vpop.f32.mrb[21].mxu0 }
 0x34c   : > { %v1209_v17 = vmax.f32 %v1094_v15, 0.0  ;;  %v1679_v18 = vpop.f32.mrb[22].mxu0 }
 0x34d   : > { %v1239_v20 = vmax.f32 %v1207_v13, %v1211_v14  ;;  %v1212_v21 = vmax.f32 %v1679_v18, 0.0  ;;  %v1097_v22 = vpop.f32.mrb[23].mxu0 }
 0x34e   : > { %v1237_v24 = vmax.f32 %v1205_v16, %v1209_v17  ;;  %v1210_v25 = vmax.f32 %v1097_v22, 0.0 }
 0x34f   : > { %v1240_v26 = vmax.f32 %v1208_v19, %v1212_v21 }
 0x350   : > { %v1238_v27 = vmax.f32 %v1206_v23, %v1210_v25 }
 0x352   : > { %v1682_v28 = vpop.f32.mrb[24].mxu0 }
 0x353   : > { %v1215_v29 = vmax.f32 %v1682_v28, 0.0  ;;  %v1110_v30 = vpop.f32.mrb[25].mxu0 }
 0x354   : > { %v1213_v31 = vmax.f32 %v1110_v30, 0.0  ;;  %v1683_v32 = vpop.f32.mrb[26].mxu0 }
 0x355   : > { %v1243_v33 = vmax.f32 %v1239_v20, %v1215_v29  ;;  %v1216_v34 = vmax.f32 %v1683_v32, 0.0  ;;  %v1113_v35 = vpop.f32.mrb[27].mxu0 }
 0x356   : > { %v1241_v36 = vmax.f32 %v1237_v24, %v1213_v31  ;;  %v1214_v37 = vmax.f32 %v1113_v35, 0.0 }
 0x357   : > { %v1244_v38 = vmax.f32 %v1240_v26, %v1216_v34 }
 0x358   : > { %v1242_v39 = vmax.f32 %v1238_v27, %v1214_v37 }
 0x35a   : > { %v1686_v40 = vpop.f32.mrb[28].mxu0 }
 0x35b   : > { %v1219_v41 = vmax.f32 %v1686_v40, 0.0  ;;  %v1126_v42 = vpop.f32.mrb[29].mxu0 }
 0x35c   : > { %v1217_v43 = vmax.f32 %v1126_v42, 0.0  ;;  %v1687_v44 = vpop.f32.mrb[30].mxu0 }
 0x35d   : > { %v1247_v45 = vmax.f32 %v1243_v33, %v1219_v41  ;;  %v1220_v46 = vmax.f32 %v1687_v44, 0.0  ;;  %v1129_v47 = vpop.f32.mrb[31].mxu0 }
 0x35e   : > { %v1245_v48 = vmax.f32 %v1241_v36, %v1217_v43  ;;  %v1218_v49 = vmax.f32 %v1129_v47, 0.0 }
 0x35f   : > { %v1248_v50 = vmax.f32 %v1244_v38, %v1220_v46 }
 0x360   : > { %v1246_v51 = vmax.f32 %v1242_v39, %v1218_v49 }
 0x362   : > { %v1690_v52 = vpop.f32.mrb[32].mxu0 }
 0x363   : > { %v1223_v53 = vmax.f32 %v1690_v52, 0.0  ;;  %v1142_v54 = vpop.f32.mrb[33].mxu0 }
 0x364   : > { %v1221_v56 = vmax.f32 %v1142_v54, 0.0  ;;  %v1691_v58 = vpop.f32.mrb[34].mxu0 }
 0x365   : > { %v1251_v59 = vmax.f32 %v1247_v45, %v1223_v53  ;;  %v1224_v60 = vmax.f32 %v1691_v58, 0.0  ;;  %v1145_v61 = vpop.f32.mrb[35].mxu0 }
 0x366   : > { %v1249_v62 = vmax.f32 %v1245_v48, %v1221_v56  ;;  %v1222_v57 = vmax.f32 %v1145_v61, 0.0 }
 0x367   : > { %v1252_v63 = vmax.f32 %v1248_v50, %v1224_v60 }
 0x368   : > { %v1250_v55 = vmax.f32 %v1246_v51, %v1222_v57 }
 0x36a   : > { %v1694_v0 = vpop.f32.mrb[36].mxu0 }
 0x36b   : > { %v1227_v1 = vmax.f32 %v1694_v0, 0.0  ;;  %v1158_v2 = vpop.f32.mrb[37].mxu0 }
 0x36c   : > { %v1225_v3 = vmax.f32 %v1158_v2, 0.0  ;;  %v1695_v4 = vpop.f32.mrb[38].mxu0 }
 0x36d   : > { %v1255_v5 = vmax.f32 %v1251_v59, %v1227_v1  ;;  %v1228_v6 = vmax.f32 %v1695_v4, 0.0  ;;  %v1161_v7 = vpop.f32.mrb[39].mxu0 }
 0x36e   : > { %v1253_v8 = vmax.f32 %v1249_v62, %v1225_v3  ;;  %v1226_v9 = vmax.f32 %v1161_v7, 0.0 }
 0x36f   : > { %v1256_v10 = vmax.f32 %v1252_v63, %v1228_v6 }
 0x370   : > { %v1254_v11 = vmax.f32 %v1250_v55, %v1226_v9 }
 0x372   : > { %v1698_v12 = vpop.f32.mrb[40].mxu0 }
 0x373   : > { %v1231_v13 = vmax.f32 %v1698_v12, 0.0  ;;  %v1174_v14 = vpop.f32.mrb[41].mxu0 }
 0x374   : > { %v1229_v15 = vmax.f32 %v1174_v14, 0.0  ;;  %v1699_v16 = vpop.f32.mrb[42].mxu0 }
 0x375   : > { %v1259_v17 = vmax.f32 %v1255_v5, %v1231_v13  ;;  %v1232_v18 = vmax.f32 %v1699_v16, 0.0  ;;  %v1177_v19 = vpop.f32.mrb[43].mxu0 }
 0x376   : > { %v1257_v20 = vmax.f32 %v1253_v8, %v1229_v15  ;;  %v1230_v21 = vmax.f32 %v1177_v19, 0.0 }
 0x377   : > { %v1260_v22 = vmax.f32 %v1256_v10, %v1232_v18 }
 0x378   : > { %v1258_v23 = vmax.f32 %v1254_v11, %v1230_v21 }
 0x37a   : > { %v1702_v24 = vpop.f32.mrb[44].mxu0  ;;  %1268 = sbr.rel (%p1479_p4) target bundleno = 899 (0x383), region = 56 }
 0x37b   : > { %v1235_v25 = vmax.f32 %v1702_v24, 0.0  ;;  %v1190_v26 = vpop.f32.mrb[45].mxu0 }
 0x37c   : > { %v1233_v27 = vmax.f32 %v1190_v26, 0.0  ;;  %v1703_v28 = vpop.f32.mrb[46].mxu0 }
 0x37d   : > { %v1263_v29 = vmax.f32 %v1259_v17, %v1235_v25  ;;  %v1236_v30 = vmax.f32 %v1703_v28, 0.0  ;;  %v1193_v31 = vpop.f32.mrb[47].mxu0 }
 0x37e   : > { %v1261_v32 = vmax.f32 %v1257_v20, %v1233_v27  ;;  %v1234_v33 = vmax.f32 %v1193_v31, 0.0 }
 0x37f   : > { %v1264_v34 = vmax.f32 %v1260_v22, %v1236_v30  ;;  %1271 = vst [vmem:[%s301_s7 + $0x10] sm:$0xff] (!%p1479_p4), %v1263_v29 }
 0x380   : > { %v1262_v35 = vmax.f32 %v1258_v23, %v1234_v33  ;;  %1269 = vst [vmem:[%s301_s7] sm:$0xff] (!%p1479_p4), %v1261_v32 }
 0x381   : > { %1272 = vst [vmem:[%s301_s7 + $0x18] sm:$0xff] %v1264_v34 }
 0x382   : > { %1270 = vst [vmem:[%s301_s7 + $0x8] sm:$0xff] %v1262_v35 }
 0x383 PF: > { %p1480_p0 = scmp.eq.s32.totalorder %s2102_s21, 0 }
 0x385   : > { %1276 = sbr.rel (%p1480_p0) target bundleno = 910 (0x38e), region = 60 }
 0x388   : > { %v1279_v38 = vld [vmem:[%s301_s7 + $0x10] sm:$0xff] (!%p1480_p0) }
 0x389   : > { %v1277_v36 = vld [vmem:[%s301_s7] sm:$0xff] (!%p1480_p0)  ;;  %v1278_v37 = vld [vmem:[%s301_s7 + $0x8] sm:$0xff] (!%p1480_p0)  ;;  %v1283_v41 = vmax.f32 (!%p1480_p0), %v1279_v38, %v1263_v29 }
 0x38a   : > { %v1281_v39 = vmax.f32 (!%p1480_p0), %v1277_v36, %v1261_v32  ;;  %v1282_v40 = vmax.f32 (!%p1480_p0), %v1278_v37, %v1262_v35  ;;  %v1280_v42 = vld [vmem:[%s301_s7 + $0x18] sm:$0xff] (!%p1480_p0) }
 0x38b   : > { %v1284_v43 = vmax.f32 (!%p1480_p0), %v1280_v42, %v1264_v34  ;;  %1287 = vst [vmem:[%s301_s7 + $0x10] sm:$0xff] (!%p1480_p0), %v1283_v41 }
 0x38c   : > { %1285 = vst [vmem:[%s301_s7] sm:$0xff] %v1281_v39  ;;  %1286 = vst [vmem:[%s301_s7 + $0x8] sm:$0xff] %v1282_v40 }
 0x38d   : > { %1288 = vst [vmem:[%s301_s7 + $0x18] sm:$0xff] %v1284_v43 }
 0x38e PF: > { %s2544_s9 = sld [smem:[#allocation20_spill]]  ;;  %s2545_s18 = sld [smem:[#allocation23_spill]] }
 0x38f   : > { %s2546_s17 = sld [smem:[#allocation27_spill]]  ;;  %s1303_s4 = sshll.u32 %s301_s7, 4  ;;  %s2438_s4 = int_to_ptr.vmem [resolvable:$true] %s1303_s4 }
 0x390   : > { %s2442_s15 = scalar_lea.sflag [#allocation4], %s299_s6  ;;  %s1988_s27 = scalar_lea.vmem %s2438_s4, 512 }
 0x391   : > { %p1989_p1 = scmp.ne.s32.totalorder %s2438_s4, %s1988_s27  ;;  %s2130_s22 = smov [#allocation10]  }
 0x392   : > { %s1992_s12 = sshll.u32 %s2130_s22, 4  ;;  %s1993_s12 = int_to_ptr.vmem [resolvable:$false] %s1992_s12 }
 0x393   : > { %s1994_s14 = scalar_lea.vmem %s1993_s12, 1024  ;;  %p1995_p13 = scmp.lt.s32.totalorder %s2438_s4, %s1993_s12 }
 0x394   : > { %s1487_s29 = sshll.u32 %s2544_s9, 9  ;;  %p2548_p2 = scmp.ne.s32.totalorder %s2545_s18, 0 }
 0x395   : > { %s2547_s10 = smov %s2546_s17  ;;  %s2436_s8 = scalar_lea.hbm %s2546_s17, %s1487_s29 }
 0x396   : > { %p1990_p8 = pnand %p1989_p1, %p2548_p2  ;;  %p1996_p6 = scmp.lt.s32.totalorder %s1994_s14, %s1988_s27 }
 0x398   : > { %p1991_p10 = pneg %p1990_p8  ;;  %p1997_p7 = por %p1996_p6, %p1995_p13 }
 0x39a   : > { %p1998_p12 = pnand %p1997_p7, %p1991_p10 }
 0x39c   : > { %2001 = shalt.err (!%p1998_p12)
}
 0x39d   : > { %s2002_s13 = scalar_lea.hbm %s2436_s8, 512  ;;  %s2006_s28 = scalar_lea.hbm %s2547_s10, 1024 }
 0x39e   : > { %p2003_p3 = scmp.ne.s32.totalorder %s2436_s8, %s2002_s13  ;;  %p2007_p11 = scmp.lt.u32.totalorder %s2436_s8, %s2547_s10 }
 0x39f   : > { %p2008_p4 = scmp.lt.u32.totalorder %s2006_s28, %s2002_s13  ;;  %p2010_p1 = scmp.lt.u32.totalorder %s2002_s13, %s2436_s8 }
 0x3a0   : > { %p2004_p5 = pnand %p2003_p3, %p2548_p2 }
 0x3a1   : > { %p2009_p0 = por %p2008_p4, %p2007_p11 }
 0x3a2   : > { %p2005_p9 = pneg %p2004_p5 }
 0x3a3   : > { %p2011_p8 = por %p2010_p1, %p2009_p0 }
 0x3a5   : > { %p2012_p10 = pnand %p2011_p8, %p2005_p9 }
 0x3a7   : > { %2015 = shalt.err (!%p2012_p10)
}
 0x3a8   : > { %s2131_s7 = smov 128   ;;  %s2132_s9 = smov 8  }
 0x3a9   : > { %1741 = dma.vmem_to_hbm [thread:$0]  (%p2548_p2), %s2438_s4, 512, %s2436_s8, %s2442_s15, %s2131_s7, %s2131_s7, %s2132_s9  }
 0x3aa PF: > { %s2549_s29 = sld [smem:[#allocation18_spill]]  ;;  %s2550_s30 = sld [smem:[#allocation26_spill]] }
 0x3ab   : > { %p1763_p13 = scmp.ge.s32.totalorder %s2118_s25, 2 }
 0x3b0   : > { %s1318_s21 = sand.u32 1, %s2549_s29   ;;  %p2551_p6 = scmp.ne.s32.totalorder %s2550_s30, 0 }
 0x3b1   : > { %s1319_s17 = scalar_lea.sflag [#allocation4], %s1318_s21 }
 0x3b2   : > { %p1754_p7 = pnand %p1763_p13, %p2551_p6 }
 0x3b4   : > { %2073 = dma.done.wait (!%p1754_p7), %s1319_s17, 512  }
 0x3b5   : > { %2075 = vsyncadd (!%p1754_p7), %s1319_s17, 4294966784  ;;  %s22_s25 = sadd.s32 1, %s2118_s25   ;;  %s2552_s27 = sld [smem:[#allocation19_spill]] }
 0x3b6   : > { %p19_p12 = scmp.ge.s32.totalorder %s22_s25, 6   ;;  %s2553_s17 = sld [smem:[#allocation24_spill]] }
 0x3b7   : > { %s2554_s8 = sld [smem:[#allocation25_spill]]  ;;  %s2555_s4 = sld [smem:[#allocation21_spill]] }
 0x3b8   : > { %s2556_s12 = sld [smem:[#allocation22_spill]]  ;;  %s2557_s15 = smov %s2082_s16 }
 0x3b9   : > { %s2559_s18 = smov %s2094_s19  ;;  %s2560_s19 = smov %s2098_s20 }
 0x3ba   : > { %s2562_s21 = smov %s2110_s23  ;;  %s2563_s22 = smov %s2114_s24 }
 0x3bb   : > { %s2558_s16 = smov %s2552_s27  ;;  %21 = sbr.rel (!%p19_p12) target bundleno = 13 (0xd), region = 106 }
 0x3bd   : > { %s2561_s20 = smov %s2554_s8  ;;  %s2564_s23 = smov %s2555_s4 }
 0x3be   : > { %s2565_s24 = smov %s2556_s12 }
 0x3c2   :  { %1324 = vsyncpa [#allocation3], 1 }
 0x3c3   :  { %1326 = vsyncpa [#allocation3 + $0x1], 1 }
 0x3c4   :  { %1327 = vsyncpa [#allocation6], 1 }
 0x3c5   :  { %1328 = vsyncpa [#allocation9], 1 }
 0x3c6   :  { %1329 = vsyncpa [#allocation4], 1 }
 0x3c7   :  { %1331 = vsyncpa [#allocation4 + $0x1], 1 }

</bundles_post_ra>
